<compile_context>
chip_gen: v7x
topology: tpu7x:2x2x1
jax: 0.10.0
libtpu: 0.0.40
codegen_flags: <defaults>
</compile_context>

<pallas_src>
import functools

import jax
import jax.numpy as jnp
from jax import lax
from jax.experimental import pallas as pl
from jax.experimental.pallas import tpu as pltpu


def _clip_loss_kernel(t_ref, s_ref, o_ref, *, n_rows):
    """Fused CLIP loss.

    t_ref: (N, D) teacher features (VMEM)
    s_ref: (N, D) student features (VMEM)
    o_ref: (1, 1) scalar loss (SMEM)
    """
    eps = jnp.float32(1e-12)

    t = t_ref[...].astype(jnp.float32)                                   # (N, D)
    s = s_ref[...].astype(jnp.float32)                                   # (N, D)

    # L2 normalization along the feature axis (matches F.normalize, p=2, eps=1e-12).
    t_nrm = jnp.sqrt(jnp.sum(t * t, axis=-1, keepdims=True))             # (N, 1)
    s_nrm = jnp.sqrt(jnp.sum(s * s, axis=-1, keepdims=True))             # (N, 1)
    t = t / jnp.maximum(t_nrm, eps)
    s = s / jnp.maximum(s_nrm, eps)

    # logits_per_teacher = t @ s.T  (N, N); logits_per_student is its transpose,
    # handled below via column-wise reductions on the same tile (no re-matmul,
    # no explicit transpose).
    logits = lax.dot_general(
        t, s, (((1,), (1,)), ((), ())), preferred_element_type=jnp.float32
    )                                                                    # (N, N)

    # Row-wise logsumexp -> cross_entropy(logits_per_teacher, arange).
    m_r = jnp.max(logits, axis=-1, keepdims=True)                        # (N, 1)
    lse_r = m_r + jnp.log(jnp.sum(jnp.exp(logits - m_r), axis=-1, keepdims=True))

    # Column-wise logsumexp -> cross_entropy(logits_per_student, arange).
    m_c = jnp.max(logits, axis=0, keepdims=True)                         # (1, N)
    lse_c = m_c + jnp.log(jnp.sum(jnp.exp(logits - m_c), axis=0, keepdims=True))

    # Diagonal (correct-pair logits) via an iota mask + full reduction.
    row_ids = lax.broadcasted_iota(jnp.int32, logits.shape, 0)
    col_ids = lax.broadcasted_iota(jnp.int32, logits.shape, 1)
    diag_sum = jnp.sum(jnp.where(row_ids == col_ids, logits, jnp.float32(0.0)))

    total = 0.5 * (jnp.sum(lse_r) + jnp.sum(lse_c)) - diag_sum
    o_ref[0, 0] = total * jnp.float32(1.0 / n_rows)


def clip_loss(teacher_features, student_features):
    """JAX/Pallas equivalent of CLIPLoss.forward."""
    d_t = teacher_features.shape[-1]
    d_s = student_features.shape[-1]
    t2 = teacher_features.reshape(-1, d_t)
    s2 = student_features.reshape(-1, d_s)
    n = t2.shape[0]
    assert s2.shape[0] == n, "teacher/student must have the same number of rows"

    kernel = functools.partial(_clip_loss_kernel, n_rows=n)

    out = pl.pallas_call(
        kernel,
        out_shape=jax.ShapeDtypeStruct((1, 1), jnp.float32),
        in_specs=[
            pl.BlockSpec(memory_space=pltpu.VMEM),
            pl.BlockSpec(memory_space=pltpu.VMEM),
        ],
        out_specs=pl.BlockSpec(memory_space=pltpu.SMEM),
    )(t2, s2)
    return out[0, 0]


def _reference_clip_loss(teacher_features, student_features):
    t = teacher_features.reshape(-1, teacher_features.shape[-1]).astype(jnp.float32)
    s = student_features.reshape(-1, student_features.shape[-1]).astype(jnp.float32)
    t = t / jnp.maximum(jnp.linalg.norm(t, axis=-1, keepdims=True), 1e-12)
    s = s / jnp.maximum(jnp.linalg.norm(s, axis=-1, keepdims=True), 1e-12)
    logits_per_teacher = t @ s.T
    logits_per_student = s @ t.T
    n = t.shape[0]
    idx = jnp.arange(n)

    def ce(logits):
        logp = jax.nn.log_softmax(logits, axis=-1)
        return -jnp.mean(logp[idx, idx])

    return 0.5 * (ce(logits_per_teacher) + ce(logits_per_student))


if __name__ == "__main__":
    # Small, module-consistent shapes: (batch=2, seq=8, hidden=32) -> N=16 rows.
    key = jax.random.PRNGKey(0)
    k1, k2 = jax.random.split(key)
    B, T, D = 2, 8, 32

    teacher = jax.random.normal(k1, (B, T, D), dtype=jnp.float32)
    student = jax.random.normal(k2, (B, T, D), dtype=jnp.float32)

    loss = clip_loss(teacher, student)
    loss = jax.block_until_ready(loss)

    ref = _reference_clip_loss(teacher, student)
    assert jnp.allclose(loss, ref, rtol=5e-3, atol=5e-3), (loss, ref)

    print("KERNEL_OK")
</pallas_src>

<mosaic_0001>
module attributes {stable_mosaic.version = 11 : i64} {
  func.func @_clip_loss_kernel(%arg0: memref<16x32xf32, #tpu.memory_space<vmem>>, %arg1: memref<16x32xf32, #tpu.memory_space<vmem>>, %arg2: memref<1x1xf32, #tpu.memory_space<smem>>) attributes {dimension_semantics = [], scalar_prefetch = 0 : i64, scratch_operands = 0 : i64, tpu.core_type = #tpu.core_type<tc>} {
    %c0 = arith.constant 0 : index
    %c0_0 = arith.constant 0 : index
    %0 = vector.load %arg0[%c0, %c0_0] : memref<16x32xf32, #tpu.memory_space<vmem>>, vector<16x32xf32>
    %c0_1 = arith.constant 0 : index
    %c0_2 = arith.constant 0 : index
    %1 = vector.load %arg1[%c0_1, %c0_2] : memref<16x32xf32, #tpu.memory_space<vmem>>, vector<16x32xf32>
    %2 = arith.mulf %0, %0 : vector<16x32xf32>
    %cst = arith.constant dense<0.000000e+00> : vector<16xf32>
    %3 = vector.multi_reduction <add>, %2, %cst [1] : vector<16x32xf32> to vector<16xf32>
    %4 = vector.shape_cast %3 : vector<16xf32> to vector<16x1xf32>
    %5 = math.sqrt %4 : vector<16x1xf32>
    %6 = arith.mulf %1, %1 : vector<16x32xf32>
    %cst_3 = arith.constant dense<0.000000e+00> : vector<16xf32>
    %7 = vector.multi_reduction <add>, %6, %cst_3 [1] : vector<16x32xf32> to vector<16xf32>
    %8 = vector.shape_cast %7 : vector<16xf32> to vector<16x1xf32>
    %9 = math.sqrt %8 : vector<16x1xf32>
    %cst_4 = arith.constant 9.99999996E-13 : f32
    %10 = vector.broadcast %cst_4 : f32 to vector<16x1xf32>
    %11 = arith.maximumf %5, %10 : vector<16x1xf32>
    %12 = vector.broadcast %11 : vector<16x1xf32> to vector<16x32xf32>
    %13 = arith.divf %0, %12 : vector<16x32xf32>
    %cst_5 = arith.constant 9.99999996E-13 : f32
    %14 = vector.broadcast %cst_5 : f32 to vector<16x1xf32>
    %15 = arith.maximumf %9, %14 : vector<16x1xf32>
    %16 = vector.broadcast %15 : vector<16x1xf32> to vector<16x32xf32>
    %17 = arith.divf %1, %16 : vector<16x32xf32>
    %cst_6 = arith.constant dense<0.000000e+00> : vector<16x16xf32>
    %18 = tpu.matmul %13, %17, %cst_6 {dimension_numbers = #tpu.dot_dimension_numbers<[1], [1], [0], [0], [0, 0, 1, 0], [], []>} : vector<16x32xf32>, vector<16x32xf32>, vector<16x16xf32> -> vector<16x16xf32>
    %cst_7 = arith.constant dense<0xFF800000> : vector<16xf32>
    %19 = vector.multi_reduction <maximumf>, %18, %cst_7 [1] : vector<16x16xf32> to vector<16xf32>
    %20 = vector.shape_cast %19 : vector<16xf32> to vector<16x1xf32>
    %21 = vector.broadcast %20 : vector<16x1xf32> to vector<16x16xf32>
    %22 = arith.subf %18, %21 : vector<16x16xf32>
    %23 = math.exp %22 : vector<16x16xf32>
    %cst_8 = arith.constant dense<0.000000e+00> : vector<16xf32>
    %24 = vector.multi_reduction <add>, %23, %cst_8 [1] : vector<16x16xf32> to vector<16xf32>
    %25 = vector.shape_cast %24 : vector<16xf32> to vector<16x1xf32>
    %26 = math.log %25 : vector<16x1xf32>
    %27 = arith.addf %20, %26 : vector<16x1xf32>
    %cst_9 = arith.constant dense<0xFF800000> : vector<16xf32>
    %28 = vector.multi_reduction <maximumf>, %18, %cst_9 [0] : vector<16x16xf32> to vector<16xf32>
    %29 = vector.shape_cast %28 : vector<16xf32> to vector<1x16xf32>
    %30 = vector.broadcast %29 : vector<1x16xf32> to vector<16x16xf32>
    %31 = arith.subf %18, %30 : vector<16x16xf32>
    %32 = math.exp %31 : vector<16x16xf32>
    %cst_10 = arith.constant dense<0.000000e+00> : vector<16xf32>
    %33 = vector.multi_reduction <add>, %32, %cst_10 [0] : vector<16x16xf32> to vector<16xf32>
    %34 = vector.shape_cast %33 : vector<16xf32> to vector<1x16xf32>
    %35 = math.log %34 : vector<1x16xf32>
    %36 = arith.addf %29, %35 : vector<1x16xf32>
    %37 = tpu.iota {dimensions = array<i32: 0>} : vector<16x16xi32>
    %38 = tpu.iota {dimensions = array<i32: 1>} : vector<16x16xi32>
    %39 = arith.cmpi eq, %37, %38 : vector<16x16xi32>
    %cst_11 = arith.constant 0.000000e+00 : f32
    %40 = vector.broadcast %cst_11 : f32 to vector<16x16xf32>
    %41 = arith.select %39, %18, %40 : vector<16x16xi1>, vector<16x16xf32>
    %42 = vector.shape_cast %41 : vector<16x16xf32> to vector<1x16x16xf32>
    %cst_12 = arith.constant dense<0.000000e+00> : vector<1xf32>
    %43 = vector.multi_reduction <add>, %42, %cst_12 [1, 2] : vector<1x16x16xf32> to vector<1xf32>
    %44 = vector.shape_cast %43 : vector<1xf32> to vector<1x1x1xf32>
    %45 = vector.extract %44[0, 0, 0] : f32 from vector<1x1x1xf32>
    %46 = vector.shape_cast %27 : vector<16x1xf32> to vector<1x16x1xf32>
    %cst_13 = arith.constant dense<0.000000e+00> : vector<1xf32>
    %47 = vector.multi_reduction <add>, %46, %cst_13 [1, 2] : vector<1x16x1xf32> to vector<1xf32>
    %48 = vector.shape_cast %47 : vector<1xf32> to vector<1x1x1xf32>
    %49 = vector.extract %48[0, 0, 0] : f32 from vector<1x1x1xf32>
    %50 = vector.shape_cast %36 : vector<1x16xf32> to vector<1x1x16xf32>
    %cst_14 = arith.constant dense<0.000000e+00> : vector<1xf32>
    %51 = vector.multi_reduction <add>, %50, %cst_14 [1, 2] : vector<1x1x16xf32> to vector<1xf32>
    %52 = vector.shape_cast %51 : vector<1xf32> to vector<1x1x1xf32>
    %53 = vector.extract %52[0, 0, 0] : f32 from vector<1x1x1xf32>
    %54 = arith.addf %49, %53 : f32
    %cst_15 = arith.constant 5.000000e-01 : f32
    %55 = arith.mulf %cst_15, %54 : f32
    %56 = arith.subf %55, %45 : f32
    %cst_16 = arith.constant 6.250000e-02 : f32
    %57 = arith.mulf %56, %cst_16 : f32
    %c0_17 = arith.constant 0 : index
    %c0_18 = arith.constant 0 : index
    %58 = memref.load %arg2[%c0_17, %c0_18] : memref<1x1xf32, #tpu.memory_space<smem>>
    memref.store %57, %arg2[%c0_17, %c0_18] : memref<1x1xf32, #tpu.memory_space<smem>>
    return
  }
}

</mosaic_0001>

<bundles_post_ra>
// kernel: tpu_custom_call.1
= control target key start
LH: loop header
LB: loop body
LE: loop exit
PB: predicated region body
PF: predicated region fallthrough
CT: control target
= control target key end

     0   :  { %7 = vsyncpa [#allocation3], 0  ;;  %s513_s0 = inlined_call_operand.hbm [shape: f32[16,32], index: 0, kind: input, shape index: {}]   ;;  %s514_s1 = inlined_call_operand.hbm [shape: f32[16,32], index: 1, kind: input, shape index: {}]   ;;  %s515_s2 = inlined_call_operand.hbm [shape: f32[1,1], index: 2, kind: output, shape index: {}]  }
   0x1   :  { %8 = vsyncpa [#allocation6], 0 }
   0x2   :  { %9 = vsyncpa [#allocation4], 0  ;;  %s426_s9 = smov [#allocation2]   ;;  %s366_s13 = scalar_lea.hbm %s513_s0, 256 }
   0x3   :  { %s15_s10 = sshll.u32 %s426_s9, 4  ;;  %p367_p0 = scmp.ne.s32.totalorder %s513_s0, %s366_s13  ;;  %s16_s10 = int_to_ptr.vmem [resolvable:$true] %s15_s10 }
   0x4   :  { %p370_p1 = scmp.lt.u32.totalorder %s366_s13, %s513_s0 }
   0x6   :  { %p372_p2 = pnand %p370_p1, %p367_p0 }
   0x8   :  { %375 = shalt.err (!%p372_p2)
}
   0x9   :  { %s376_s18 = scalar_lea.vmem %s16_s10, 256  ;;  %p381_p4 = scmp.lt.s32.totalorder %s16_s10, %s16_s10 }
   0xa   :  { %p377_p3 = scmp.ne.s32.totalorder %s16_s10, %s376_s18  ;;  %p382_p5 = scmp.lt.s32.totalorder %s376_s18, %s376_s18 }
   0xc   :  { %p383_p6 = por %p382_p5, %p381_p4 }
   0xe   :  { %p384_p7 = pnand %p383_p6, %p377_p3 }
  0x10   :  { %387 = shalt.err (!%p384_p7)
}
  0x11   :  { %s427_s19 = smov 128   ;;  %s428_s20 = smov 8  }
  0x12   :  { %21 = dma.hbm_to_vmem [thread:$0]  %s513_s0, 256, %s16_s10, [#allocation3], %s427_s19, %s427_s19, %s428_s20  }
  0x13   :  { %s429_s23 = smov [#allocation5]   ;;  %s388_s27 = scalar_lea.hbm %s514_s1, 256 }
  0x14   :  { %s27_s24 = sshll.u32 %s429_s23, 4  ;;  %p389_p8 = scmp.ne.s32.totalorder %s514_s1, %s388_s27  ;;  %s28_s24 = int_to_ptr.vmem [resolvable:$true] %s27_s24 }
  0x15   :  { %p392_p9 = scmp.lt.u32.totalorder %s388_s27, %s514_s1 }
  0x17   :  { %p394_p10 = pnand %p392_p9, %p389_p8 }
  0x19   :  { %397 = shalt.err (!%p394_p10)
}
  0x1a   :  { %s398_s4 = scalar_lea.vmem %s28_s24, 256  ;;  %p403_p12 = scmp.lt.s32.totalorder %s28_s24, %s28_s24 }
  0x1b   :  { %p399_p11 = scmp.ne.s32.totalorder %s28_s24, %s398_s4  ;;  %p404_p13 = scmp.lt.s32.totalorder %s398_s4, %s398_s4 }
  0x1d   :  { %p405_p0 = por %p404_p13, %p403_p12 }
  0x1f   :  { %p406_p1 = pnand %p405_p0, %p399_p11 }
  0x21   :  { %409 = shalt.err (!%p406_p1)
}
  0x22   :  { %33 = dma.hbm_to_vmem [thread:$0]  %s514_s1, 256, %s28_s24, [#allocation6], %s427_s19, %s427_s19, %s428_s20  }
  0x23   :  { %420 = dma.done.wait [#allocation3], 256  }
  0x24   :  { %421 = vsyncadd [#allocation3], 4294967040 }
  0x25   :  { %422 = dma.done.wait [#allocation6], 256  }
  0x26   :  { %423 = vsyncadd [#allocation6], 4294967040  ;;  %v470_v0 = vld [vmem:[#allocation5] sm:$0xff]  ;;  %vm46_vm0 = vcmask 261120   ;;  %v40_v1 = vld [vmem:[#allocation2] sm:$0xff]  ;;  %v238_v49 = vlaneseq  ;;  %vm188_vm10 = vcmask 130048  }
  0x27   :  { %v472_v2 = vld [vmem:[#allocation5 + $0x8] sm:$0xff]  ;;  %v67_v3 = vmul.f32 %v470_v0, %v470_v0  ;;  %v44_v4 = vmul.f32 %v40_v1, %v40_v1  ;;  %v478_v6 = vld [vmem:[#allocation2 + $0x8] sm:$0xff]  ;;  %vm320_vm9 = vmpackc.low %vm46_vm0, %vm46_vm0  ;;  %vm272_vm13 = vcmask 122880   ;;  %vm259_vm14 = vcmask 7168   ;;  %s410_s14 = scalar_lea.hbm %s515_s2, 16 }
  0x28   :  { %v68_v5 = vmul.f32 %v472_v2, %v472_v2  ;;  %v45_v7 = vmul.f32 %v478_v6, %v478_v6  ;;  %v239_v50 = vshrl.u32 %v238_v49, 7  ;;  %v242_v52 = vand.u32 127, %v238_v49  ;;  %p411_p2 = scmp.ne.s32.totalorder %s515_s2, %s410_s14  ;;  %p414_p3 = scmp.lt.u32.totalorder %s410_s14, %s515_s2 }
  0x29   :  { %v69_v8 = vsel %vm46_vm0, %v67_v3, 0.0  ;;  %v47_v9 = vsel %vm46_vm0, %v44_v4, 0.0 }
  0x2a   :  { %70 = vadd.xlane.f32.xlu0 %v69_v8  ;;  %48 = vadd.xlane.f32.xlu1 %v47_v9  ;;  %v72_v10 = vsel %vm46_vm0, %v68_v5, 0.0  ;;  %v50_v11 = vsel %vm46_vm0, %v45_v7, 0.0  ;;  %v240_v51 = vadd.s32 8, %v239_v50  ;;  %vm243_vm12 = vcmp.eq.s32.totalorder %v239_v50, %v242_v52  ;;  %p416_p4 = pnand %p414_p3, %p411_p2 }
  0x2c   :  { %vm244_vm11 = vcmp.eq.s32.totalorder %v240_v51, %v242_v52 }
  0x2e   :  { %73 = vadd.xlane.f32.xlu0 %v72_v10  ;;  %51 = vadd.xlane.f32.xlu1 %v50_v11 }
  0xb7   :  { %v71_v12 = vpop.xlane.xlu0 %70  ;;  %v49_v13 = vpop.xlane.xlu1 %48 }
  0xb8   :  { %336 = vrsqrt.f32 %v71_v12  ;;  %vm77_vm1 = vcmp.eq.f32.partialorder %v71_v12, inf  ;;  %v80_v19 = vand.u32 2147483648, %v71_v12  ;;  %vm79_vm2 = vcmp.eq.f32.partialorder %v71_v12, 0.0 }
  0xb9   :  { %338 = vrsqrt.f32 %v49_v13  ;;  %vm55_vm3 = vcmp.eq.f32.partialorder %v49_v13, inf  ;;  %v58_v22 = vand.u32 2147483648, %v49_v13  ;;  %vm57_vm4 = vcmp.eq.f32.partialorder %v49_v13, 0.0 }
  0xbb   :  { %v74_v14 = vpop.xlane.xlu0 %73  ;;  %v52_v15 = vpop.xlane.xlu1 %51 }
  0xbc   :  { %340 = vrsqrt.f32 %v74_v14  ;;  %vm84_vm5 = vcmp.eq.f32.partialorder %v74_v14, inf  ;;  %v87_v30 = vand.u32 2147483648, %v74_v14  ;;  %vm86_vm6 = vcmp.eq.f32.partialorder %v74_v14, 0.0 }
  0xbd   :  { %342 = vrsqrt.f32 %v52_v15  ;;  %vm62_vm7 = vcmp.eq.f32.partialorder %v52_v15, inf  ;;  %v65_v37 = vand.u32 2147483648, %v52_v15  ;;  %vm64_vm8 = vcmp.eq.f32.partialorder %v52_v15, 0.0 }
  0xc2   :  { %v337_v16 = vpop.eup %336 }
  0xc3   :  { %v339_v17 = vpop.eup %338  ;;  %v76_v18 = vmul.f32 %v337_v16, %v71_v12 }
  0xc4   :  { %v54_v20 = vmul.f32 %v339_v17, %v49_v13 }
  0xc5   :  { %v78_v21 = vsel %vm77_vm1, %v71_v12, %v76_v18 }
  0xc6   :  { %v341_v23 = vpop.eup %340  ;;  %v81_v24 = vsel %vm79_vm2, %v80_v19, %v78_v21  ;;  %v56_v25 = vsel %vm55_vm3, %v49_v13, %v54_v20 }
  0xc7   :  { %v343_v26 = vpop.eup %342  ;;  %v95_v27 = vmax.f32 %v81_v24, 1e-12  ;;  %v83_v28 = vmul.f32 %v341_v23, %v74_v14  ;;  %v59_v29 = vsel %vm57_vm4, %v58_v22, %v56_v25 }
  0xc8   :  { %v61_v31 = vmul.f32 %v343_v26, %v52_v15  ;;  %v89_v32 = vmax.f32 %v59_v29, 1e-12 }
  0xc9   :  { %v85_v33 = vsel %vm84_vm5, %v74_v14, %v83_v28 }
  0xca   :  { %v88_v34 = vsel %vm86_vm6, %v87_v30, %v85_v33  ;;  %344 = vrcp.f32 %v89_v32  ;;  %v63_v36 = vsel %vm62_vm7, %v52_v15, %v61_v31 }
  0xcb   :  { %v96_v35 = vmax.f32 %v88_v34, 1e-12  ;;  %346 = vrcp.f32 %v95_v27  ;;  %v66_v38 = vsel %vm64_vm8, %v65_v37, %v63_v36 }
  0xcc   :  { %v90_v39 = vmax.f32 %v66_v38, 1e-12 }
  0xcd   :  { %348 = vrcp.f32 %v96_v35 }
  0xce   :  { %350 = vrcp.f32 %v90_v39 }
  0xd4   :  { %v345_v40 = vpop.eup %344 }
  0xd5   :  { %v347_v41 = vpop.eup %346  ;;  %v92_v42 = vmul.f32 %v345_v40, %v40_v1 }
  0xd6   :  { %v98_v44 = vmul.f32 %v347_v41, %v470_v0 }
  0xd7   :  { %v349_v43 = vpop.eup %348  ;;  %316 = vmatprep.mubr.msk.f32.mxu0 %vm46_vm0, %v92_v42 }
  0xd8   :  { %v100_v45 = vmul.f32 %v349_v43, %v472_v2  ;;  %v351_v47 = vpop.eup %350 }
  0xd9   :  { %v94_v48 = vmul.f32 %v351_v47, %v478_v6 }
  0xda   :  { %v319_v46 = vpack.c.bf16 %v100_v45, %v98_v44 }
  0xdc   :  { %321 = vmatprep.subr.msk.bf16.mxu0 %vm320_vm9, %v319_v46 }
  0xdd   :  { %324 = vmatpush3.bf16.xpose.msk.msra.mxu0 %vm320_vm9, %v319_v46 }
  0xe4   :  { %317 = vmatmul.mubr.msk.f32.vlgmr.msra.gmra.mrb[0].mxu0 %vm46_vm0, %v94_v48 }
 0x1b7   :  { %v318_v53 = vpop.f32.mrb[0].mxu0 }
 0x1b8   :  { %v179_v54 = vpop.f32.mrb[1].mxu0  ;;  %v192_v55 = vsel %vm188_vm10, %v318_v53, -inf  ;;  %v246_v56 = vsel %vm244_vm11, %v318_v53, 0.0 }
 0x1b9   :  { %193 = vmax.xlane.f32.xlu1 %v192_v55  ;;  %v189_v57 = vsel %vm188_vm10, %v179_v54, -inf  ;;  %v245_v58 = vsel %vm243_vm12, %v179_v54, 0.0  ;;  %v248_v59 = vsel %vm188_vm10, %v246_v56, 0.0 }
 0x1ba   :  { %190 = vmax.xlane.f32.xlu0 %v189_v57  ;;  %v213_v60 = vmax.f32 %v189_v57, %v192_v55  ;;  %v247_v61 = vsel %vm188_vm10, %v245_v58, 0.0 }
 0x1bb   :  { %v249_v62 = vadd.f32 %v248_v59, %v247_v61 }
 0x1bc   :  { %v214_v63 = vrot.slane %v213_v60, 4 }
 0x1be   :  { %v215_v0 = vmax.f32 %v213_v60, %v214_v63 }
 0x1c0   :  { %v216_v1 = vrot.slane %v215_v0, 2 }
 0x1c2   :  { %v217_v2 = vmax.f32 %v215_v0, %v216_v1 }
 0x1c4   :  { %v218_v3 = vrot.slane %v217_v2, 1 }
 0x1c6   :  { %v219_v4 = vmax.f32 %v217_v2, %v218_v3 }
 0x1c8   :  { %v220_v5 = vsub.f32 %v179_v54, %v219_v4  ;;  %v221_v6 = vsub.f32 %v318_v53, %v219_v4 }
 0x1ca   :  { %v222_v7 = vmul.f32 1.442695, %v220_v5  ;;  %v224_v8 = vmul.f32 1.442695, %v221_v6 }
 0x1cc   :  { %352 = vpow2.f32 %v222_v7 }
 0x1cd   :  { %354 = vpow2.f32 %v224_v8 }
 0x1d6   :  { %v353_v9 = vpop.eup %352 }
 0x1d7   :  { %v355_v10 = vpop.eup %354  ;;  %v226_v11 = vsel %vm188_vm10, %v353_v9, 0.0 }
 0x1d8   :  { %v227_v12 = vsel %vm188_vm10, %v355_v10, 0.0 }
 0x1d9   :  { %v228_v13 = vadd.f32 %v227_v12, %v226_v11 }
 0x1db   :  { %v229_v14 = vrot.slane %v228_v13, 4 }
 0x1dd   :  { %v230_v15 = vadd.f32 %v229_v14, %v228_v13 }
 0x1df   :  { %v231_v16 = vrot.slane %v230_v15, 2 }
 0x1e1   :  { %v232_v17 = vadd.f32 %v231_v16, %v230_v15 }
 0x1e3   :  { %v233_v18 = vrot.slane %v232_v17, 1 }
 0x1e5   :  { %v234_v19 = vadd.f32 %v233_v18, %v232_v17 }
 0x1e7   :  { %356 = vlog2.f32 %v234_v19 }
 0x1f1   :  { %v357_v20 = vpop.eup %356 }
 0x1f2   :  { %v236_v21 = vmul.f32 0.6931472, %v357_v20 }
 0x1f4   :  { %v237_v22 = vadd.f32 %v236_v21, %v219_v4 }
 0x1f6   :  { %v273_v33 = vsel %vm272_vm13, %v237_v22, 0.0 }
 0x246   :  { %v194_v23 = vpop.xlane.xlu1 %193 }
 0x247   :  { %v196_v24 = vsub.f32 %v318_v53, %v194_v23  ;;  %v191_v25 = vpop.xlane.xlu0 %190 }
 0x248   :  { %v195_v26 = vsub.f32 %v179_v54, %v191_v25 }
 0x249   :  { %v199_v27 = vmul.f32 1.442695, %v196_v24 }
 0x24a   :  { %v197_v28 = vmul.f32 1.442695, %v195_v26 }
 0x24b   :  { %358 = vpow2.f32 %v199_v27 }
 0x24c   :  { %360 = vpow2.f32 %v197_v28 }
 0x255   :  { %v359_v29 = vpop.eup %358 }
 0x256   :  { %v361_v30 = vpop.eup %360  ;;  %v204_v31 = vsel %vm188_vm10, %v359_v29, 0.0 }
 0x257   :  { %205 = vadd.xlane.f32.xlu1 %v204_v31  ;;  %v201_v32 = vsel %vm188_vm10, %v361_v30, 0.0 }
 0x258   :  { %202 = vadd.xlane.f32.xlu0 %v201_v32 }
 0x25c   :  { %250 = vadd.xlane.f32.xlu0 %v249_v62 }
 0x260   :  { %274 = vadd.xlane.f32.xlu0 %v273_v33 }
 0x2e4   :  { %v206_v34 = vpop.xlane.xlu1 %205 }
 0x2e5   :  { %362 = vlog2.f32 %v206_v34  ;;  %v203_v35 = vpop.xlane.xlu0 %202 }
 0x2e6   :  { %364 = vlog2.f32 %v203_v35 }
 0x2e9   :  { %v251_v36 = vpop.xlane.xlu0 %250 }
 0x2ea   :  { %v252_v37 = vrot.slane %v251_v36, 4 }
 0x2ec   :  { %v253_v38 = vadd.f32 %v252_v37, %v251_v36 }
 0x2ed   :  { %v275_v52 = vpop.xlane.xlu0 %274 }
 0x2ee   :  { %v254_v39 = vrot.slane %v253_v38, 2  ;;  %v276_v53 = vrot.slane %v275_v52, 4 }
 0x2ef   :  { %v363_v40 = vpop.eup %362 }
 0x2f0   :  { %v365_v41 = vpop.eup %364  ;;  %v210_v42 = vmul.f32 0.6931472, %v363_v40  ;;  %v255_v43 = vadd.f32 %v254_v39, %v253_v38  ;;  %v277_v54 = vadd.f32 %v276_v53, %v275_v52 }
 0x2f1   :  { %v208_v44 = vmul.f32 0.6931472, %v365_v41 }
 0x2f2   :  { %v256_v45 = vrot.slane %v255_v43, 1  ;;  %v212_v46 = vadd.f32 %v210_v42, %v194_v23  ;;  %v278_v55 = vrot.slane %v277_v54, 2 }
 0x2f3   :  { %v211_v47 = vadd.f32 %v208_v44, %v191_v25 }
 0x2f4   :  { %v257_v48 = vadd.f32 %v256_v45, %v255_v43  ;;  %v261_v49 = vsel %vm259_vm14, %v212_v46, 0.0  ;;  %v279_v59 = vadd.f32 %v278_v55, %v277_v54 }
 0x2f5   :  { %v260_v50 = vsel %vm259_vm14, %v211_v47, 0.0 }
 0x2f6   :  { %325 = vpush %v257_v48  ;;  %v262_v51 = vadd.f32 %v261_v49, %v260_v50  ;;  %v280_v62 = vrot.slane %v279_v59, 1 }
 0x2f8   :  { %263 = vadd.xlane.f32.xlu1 %v262_v51  ;;  %v281_v1 = vadd.f32 %v280_v62, %v279_v59 }
 0x327   :  { %s326_s1 = spop %325 }
 0x385   :  { %v264_v56 = vpop.xlane.xlu1 %263 }
 0x386   :  { %v265_v57 = vrot.slane %v264_v56, 4 }
 0x388   :  { %v266_v58 = vadd.f32 %v265_v57, %v264_v56 }
 0x38a   :  { %v267_v60 = vrot.slane %v266_v58, 2 }
 0x38c   :  { %v268_v61 = vadd.f32 %v267_v60, %v266_v58 }
 0x38e   :  { %v269_v63 = vrot.slane %v268_v61, 1 }
 0x390   :  { %v270_v0 = vadd.f32 %v269_v63, %v268_v61 }
 0x392   :  { %327 = vpush %v270_v0 }
 0x393   :  { %329 = vpush %v281_v1 }
 0x3c3   :  { %s328_s6 = spop %327 }
 0x3c4   :  { %s330_s7 = spop %329 }
 0x3c5   :  { %s283_s8 = sadd.f32 %s330_s7, %s328_s6 }
 0x3c7   :  { %s284_s9 = smul.f32 0.5, %s283_s8 }
 0x3c9   :  { %s285_s10 = ssub.f32 %s284_s9, %s326_s1 }
 0x3cb   :  { %s286_s11 = smul.f32 0.0625, %s285_s10 }
 0x3cd   :  { %288 = sst [smem:[#allocation7]] %s286_s11 }
 0x3ce   :  { %419 = shalt.err (!%p416_p4)
}
 0x3cf   :  { %s430_s19 = smov [#allocation7]  }
 0x3d0   :  { %296 = dma.smem_to_hbm %s430_s19, 16, %s515_s2, [#allocation4]  }
 0x3d1   :  { %424 = dma.done.wait [#allocation4], 16  }
 0x3d2   :  { %425 = vsyncadd [#allocation4], 4294967280 }
 0x3d3   :  { %300 = sfence }
 0x3d4   :  { %301 = vsyncpa [#allocation3], 1 }
 0x3d5   :  { %302 = vsyncpa [#allocation6], 1 }
 0x3d6   :  { %303 = vsyncpa [#allocation4], 1 }

</bundles_post_ra>
